<compile_context>
chip_gen: v7x
topology: tpu7x:2x2x1
jax: 0.10.0
libtpu: 0.0.40
codegen_flags: <defaults>
</compile_context>

<pallas_src>
import jax
import jax.numpy as jnp
from jax.experimental import pallas as pl
from jax.experimental.pallas import tpu as pltpu

N_HIDDEN = 64
LANE = 128  # TPU lane width


def mlp_kernel(x_ref, vecs_ref, w2_ref, o_ref):
    # x_ref:    (1, tm)   tm scalar inputs, lane-dense
    # vecs_ref: (64, 5)   packed columns [w1 | b1 | b2 | w3 | b3-in-row-0]
    # w2_ref:   (64, 64)  middle-layer weight, PyTorch (out, in) orientation
    # o_ref:    (1, tm)   lane-dense outputs
    x = x_ref[...]                       # (1, tm)
    vecs = vecs_ref[...]                 # (64, 5)
    w1 = vecs[:, 0:1]                    # (64, 1)
    b1 = vecs[:, 1:2]
    b2 = vecs[:, 2:3]
    w3 = vecs[:, 3:4]
    b3 = vecs[0:1, 4:5]                  # (1, 1) scalar bias

    # Layer 1: Linear(1, 64) + ReLU.  K=1 contraction -> VPU outer product
    # (an MXU matmul would pad K to 128/256 and waste >99% of the work).
    h1 = jnp.maximum(w1 * x + b1, 0.0)                              # (64, tm)

    # Layer 2: Linear(64, 64) + ReLU.  The only real matmul -> MXU.
    h2 = jnp.dot(w2_ref[...], h1, preferred_element_type=jnp.float32) + b2
    h2 = jnp.maximum(h2, 0.0)                                       # (64, tm)

    # Layer 3: Linear(64, 1).  N=1 output -> VPU multiply + sublane (XLU)
    # reduction; result is already lane-dense so the store is a full vst.
    y = jnp.sum(w3 * h2, axis=0, keepdims=True) + b3                # (1, tm)
    o_ref[...] = y.astype(o_ref.dtype)


def net_forward(x, params, *, tm=1024):
    """x: (B, 1) float32 -> (B, 1) float32 (same math as the PyTorch Net)."""
    B = x.shape[0]

    # Batch tile along lanes: multiple of 128, clamped to the padded batch.
    tm = max(LANE, min((int(tm) // LANE) * LANE, pl.cdiv(B, LANE) * LANE))
    Bp = pl.cdiv(B, tm) * tm
    grid = (Bp // tm,)

    # Lane-dense input row (padding lanes are sliced off after the call).
    x_row = jnp.pad(x.reshape(-1).astype(jnp.float32), (0, Bp - B)).reshape(1, Bp)

    # Pack all small parameter tensors into a single replicated operand:
    # columns [w1 | b1 | b2 | w3 | b3(row 0, zeros elsewhere)].
    b3_col = jnp.zeros((N_HIDDEN, 1), jnp.float32).at[0, 0].set(params["b3"][0, 0])
    vecs = jnp.concatenate(
        [params["w1"], params["b1"], params["b2"], params["w3"], b3_col], axis=1
    )  # (64, 5)
    w2 = params["w2"]

    out_row = pl.pallas_call(
        mlp_kernel,
        out_shape=jax.ShapeDtypeStruct((1, Bp), jnp.float32),
        grid_spec=pltpu.PrefetchScalarGridSpec(
            num_scalar_prefetch=0,
            grid=grid,
            in_specs=[
                pl.BlockSpec((1, tm), lambda i: (0, i)),        # x: lane-dense tile
                pl.BlockSpec(vecs.shape, lambda i: (0, 0)),     # packed params (replicated)
                pl.BlockSpec(w2.shape, lambda i: (0, 0)),       # w2 (replicated)
            ],
            out_specs=pl.BlockSpec((1, tm), lambda i: (0, i)),  # lane-dense output
        ),
        compiler_params=pltpu.CompilerParams(
            # Batch tiles are independent -> megacore split on v7x.
            dimension_semantics=("parallel",),
        ),
    )(x_row, vecs, w2)

    return out_row[0, :B].reshape(B, 1)


def init_params(key):
    """PyTorch-default-style init (U(-1/sqrt(fan_in), 1/sqrt(fan_in)))."""
    n = N_HIDDEN

    def unif(k, fan_in, shape):
        bound = 1.0 / jnp.sqrt(jnp.float32(fan_in))
        return jax.random.uniform(k, shape, jnp.float32, -bound, bound)

    k = jax.random.split(key, 6)
    return dict(
        w1=unif(k[0], 1, (n, 1)),   # Linear(1, n).weight  (out, in) = (n, 1)
        b1=unif(k[1], 1, (n, 1)),   # biases stored as columns
        w2=unif(k[2], n, (n, n)),   # Linear(n, n).weight  (out, in)
        b2=unif(k[3], n, (n, 1)),
        w3=unif(k[4], n, (n, 1)),   # Linear(n, 1).weight (1, n) stored transposed
        b3=unif(k[5], n, (1, 1)),
    )


def net_forward_ref(x, p):
    """Pure-JAX reference with PyTorch Linear semantics."""
    h1 = jnp.maximum(x @ p["w1"].T + p["b1"].T, 0.0)
    h2 = jnp.maximum(h1 @ p["w2"].T + p["b2"].T, 0.0)
    return h2 @ p["w3"] + p["b3"]


def _assert_close(a, b, tol=2e-2):
    # Scale-aware check: tolerant of MXU f32 rounding, catches semantic bugs.
    denom = float(jnp.maximum(jnp.max(jnp.abs(b)), 1.0))
    err = float(jnp.max(jnp.abs(a - b)))
    assert err / denom < tol, f"max abs err {err} (scale {denom})"


if __name__ == "__main__":
    key = jax.random.PRNGKey(0)
    pkey, xkey = jax.random.split(key)
    params = init_params(pkey)

    # Batch of scalar inputs like the original script's x = range(-150, 150, 3).
    B = 256
    x = jax.random.uniform(xkey, (B, 1), jnp.float32, minval=-150.0, maxval=150.0)

    # tm=128 -> grid=(2,): exercises batch tiling + the "parallel" grid axis.
    out = jax.block_until_ready(net_forward(x, params, tm=128))
    ref = net_forward_ref(x, params)
    assert out.shape == (B, 1)
    _assert_close(out, ref)

    # Ragged batch (100 points, exactly the original script's domain) exercises
    # the lane-padding path and the single-step (tiny-batch) tile clamp.
    x2 = jnp.arange(-150.0, 150.0, 3.0, dtype=jnp.float32).reshape(-1, 1)
    out2 = jax.block_until_ready(net_forward(x2, params))
    ref2 = net_forward_ref(x2, params)
    assert out2.shape == x2.shape
    _assert_close(out2, ref2)

    print("KERNEL_OK")
</pallas_src>

<mosaic_0001>
module attributes {stable_mosaic.version = 11 : i64} {
  func.func @mlp_kernel(%arg0: i32, %arg1: memref<1x128xf32, #tpu.memory_space<vmem>>, %arg2: memref<64x5xf32, #tpu.memory_space<vmem>>, %arg3: memref<64x64xf32, #tpu.memory_space<vmem>>, %arg4: memref<1x128xf32, #tpu.memory_space<vmem>>) attributes {dimension_semantics = [#tpu.dimension_semantics<parallel>], iteration_bounds = array<i64: 2>, scalar_prefetch = 0 : i64, scratch_operands = 0 : i64, tpu.core_type = #tpu.core_type<tc>, window_params = [{transform_indices = @transform_0, window_bounds = array<i64: 1, 128>}, {pipeline_mode = #tpu.pipeline_mode<synchronous>, transform_indices = @transform_1, window_bounds = array<i64: 64, 5>}, {pipeline_mode = #tpu.pipeline_mode<synchronous>, transform_indices = @transform_2, window_bounds = array<i64: 64, 64>}, {transform_indices = @transform_3, window_bounds = array<i64: 1, 128>}]} {
    %c0 = arith.constant 0 : index
    %c0_0 = arith.constant 0 : index
    %0 = vector.load %arg1[%c0, %c0_0] : memref<1x128xf32, #tpu.memory_space<vmem>>, vector<1x128xf32>
    %c0_1 = arith.constant 0 : index
    %c0_2 = arith.constant 0 : index
    %1 = vector.load %arg2[%c0_1, %c0_2] : memref<64x5xf32, #tpu.memory_space<vmem>>, vector<64x5xf32>
    %2 = vector.extract_strided_slice %1 {offsets = [0, 0], sizes = [64, 1], strides = [1, 1]} : vector<64x5xf32> to vector<64x1xf32>
    %3 = vector.extract_strided_slice %1 {offsets = [0, 1], sizes = [64, 1], strides = [1, 1]} : vector<64x5xf32> to vector<64x1xf32>
    %4 = vector.extract_strided_slice %1 {offsets = [0, 2], sizes = [64, 1], strides = [1, 1]} : vector<64x5xf32> to vector<64x1xf32>
    %5 = vector.extract_strided_slice %1 {offsets = [0, 3], sizes = [64, 1], strides = [1, 1]} : vector<64x5xf32> to vector<64x1xf32>
    %6 = vector.extract_strided_slice %1 {offsets = [0, 4], sizes = [1, 1], strides = [1, 1]} : vector<64x5xf32> to vector<1x1xf32>
    %7 = vector.broadcast %2 : vector<64x1xf32> to vector<64x128xf32>
    %8 = vector.broadcast %0 : vector<1x128xf32> to vector<64x128xf32>
    %9 = arith.mulf %7, %8 : vector<64x128xf32>
    %10 = vector.broadcast %3 : vector<64x1xf32> to vector<64x128xf32>
    %11 = arith.addf %9, %10 : vector<64x128xf32>
    %cst = arith.constant 0.000000e+00 : f32
    %12 = vector.broadcast %cst : f32 to vector<64x128xf32>
    %13 = arith.maximumf %11, %12 : vector<64x128xf32>
    %c0_3 = arith.constant 0 : index
    %c0_4 = arith.constant 0 : index
    %14 = vector.load %arg3[%c0_3, %c0_4] : memref<64x64xf32, #tpu.memory_space<vmem>>, vector<64x64xf32>
    %cst_5 = arith.constant dense<0.000000e+00> : vector<64x128xf32>
    %15 = tpu.matmul %14, %13, %cst_5 {dimension_numbers = #tpu.dot_dimension_numbers<[1], [0], [0], [1], [0, 0, 1, 1], [], []>} : vector<64x64xf32>, vector<64x128xf32>, vector<64x128xf32> -> vector<64x128xf32>
    %16 = vector.broadcast %4 : vector<64x1xf32> to vector<64x128xf32>
    %17 = arith.addf %15, %16 : vector<64x128xf32>
    %cst_6 = arith.constant 0.000000e+00 : f32
    %18 = vector.broadcast %cst_6 : f32 to vector<64x128xf32>
    %19 = arith.maximumf %17, %18 : vector<64x128xf32>
    %20 = vector.broadcast %5 : vector<64x1xf32> to vector<64x128xf32>
    %21 = arith.mulf %20, %19 : vector<64x128xf32>
    %cst_7 = arith.constant dense<0.000000e+00> : vector<128xf32>
    %22 = vector.multi_reduction <add>, %21, %cst_7 [0] : vector<64x128xf32> to vector<128xf32>
    %23 = vector.shape_cast %22 : vector<128xf32> to vector<1x128xf32>
    %24 = vector.broadcast %6 : vector<1x1xf32> to vector<1x128xf32>
    %25 = arith.addf %23, %24 : vector<1x128xf32>
    %c0_8 = arith.constant 0 : index
    %c0_9 = arith.constant 0 : index
    %26 = vector.load %arg4[%c0_8, %c0_9] : memref<1x128xf32, #tpu.memory_space<vmem>>, vector<1x128xf32>
    tpu.vector_store %arg4[%c0_8, %c0_9], %25 {strides = array<i32>} : memref<1x128xf32, #tpu.memory_space<vmem>>, vector<1x128xf32>,
    return
  }
  func.func @transform_0(%arg0: i32) -> (i32, i32) {
    %c0_i32 = arith.constant 0 : i32
    %c0_i32_0 = arith.constant 0 : i32
    return %c0_i32, %arg0 : i32, i32
  }
  func.func @transform_1(%arg0: i32) -> (i32, i32) {
    %c0_i32 = arith.constant 0 : i32
    %c0_i32_0 = arith.constant 0 : i32
    %c0_i32_1 = arith.constant 0 : i32
    return %c0_i32, %c0_i32_0 : i32, i32
  }
  func.func @transform_2(%arg0: i32) -> (i32, i32) {
    %c0_i32 = arith.constant 0 : i32
    %c0_i32_0 = arith.constant 0 : i32
    %c0_i32_1 = arith.constant 0 : i32
    return %c0_i32, %c0_i32_0 : i32, i32
  }
  func.func @transform_3(%arg0: i32) -> (i32, i32) {
    %c0_i32 = arith.constant 0 : i32
    %c0_i32_0 = arith.constant 0 : i32
    return %c0_i32, %arg0 : i32, i32
  }
}

</mosaic_0001>

<bundles_post_ra>
// kernel: tpu_custom_call.1
= control target key start
LH: loop header
LB: loop body
LE: loop exit
PB: predicated region body
PF: predicated region fallthrough
CT: control target
= control target key end

     0   :  { %8 = vsyncpa [#allocation3], 0  ;;  %s974_s0 = inlined_call_operand.vmem [shape: f32[1,256], index: 0, kind: input, shape index: {}]   ;;  %s975_s1 = inlined_call_operand.vmem [shape: f32[64,5], index: 1, kind: input, shape index: {}]   ;;  %s976_s2 = inlined_call_operand.vmem [shape: f32[64,64], index: 2, kind: input, shape index: {}]   ;;  %s977_s3 = inlined_call_operand.hbm [shape: f32[1,256], index: 3, kind: output, shape index: {}]  }
   0x1   :  { %10 = vsyncpa [#allocation3 + $0x1], 0  ;;  %s811_s12 = smov 0   ;;  %s813_s13 = smov 0  }
   0x2   :  { %s815_s14 = smov 0   ;;  %s817_s15 = smov 0  }
   0x3 LB: > { %s832_s16 = sadd.s32 4294967295, %s783_s15   ;;  %s575_s17 = sadd.s32 4294967294, %s783_s15   ;;  %s783_s15 = sphi %s817_s15, %s983_s15   ;;  %s779_s14 = sphi %s815_s14, %s982_s14   ;;  %s775_s13 = sphi %s813_s13, %s981_s13   ;;  %s771_s12 = sphi %s811_s12, %s980_s12  }
   0x4   : > { %s836_s18 = sadd.s32 1, %s783_s15   ;;  %s91_s19 = sadd.s32 1, %s779_s14 }
   0x5   : > { %s88_s20 = ssub.s32 %s783_s15, %s836_s18  ;;  %p101_p0 = scmp.ne.s32.totalorder %s779_s14, %s775_s13 }
   0x6   : > { %p89_p1 = scmp.eq.s32.totalorder %s88_s20, 0  ;;  %p102_p2 = scmp.eq.s32.totalorder %s832_s16, 1 }
   0x7   : > { %p107_p3 = scmp.ne.s32.totalorder %s775_s13, %s771_s12  ;;  %p108_p4 = scmp.eq.s32.totalorder %s575_s17, 1 }
   0x8   : > { %s847_s21 = scalar_select %p89_p1, %s779_s14, %s91_s19  }
   0x9   : > { %p849_p5 = por %p102_p2, %p101_p0  ;;  %p853_p6 = por %p108_p4, %p107_p3 }
   0xa   : > { %p578_p7 = scmp.ge.s32.totalorder %s783_s15, 1  ;;  %p138_p8 = scmp.lt.s32.totalorder %s783_s15, 3 }
   0xc   : > { %p139_p9 = pnand %p578_p7, %p138_p8 }
   0xd   : > { %v165_v0 = vld [vmem:[%s975_s1 + $0x10] sm:$0xff] (!%p139_p9)  ;;  %v865_v1 = vld [vmem:[%s975_s1] sm:$0xff] (!%p139_p9)  ;;  %v785_v2 = vmov (!%p139_p9), 1   ;;  %v164_v3 = vld [vmem:[%s975_s1 + $0x8] sm:$0xff] (!%p139_p9)  ;;  %v786_v4 = vmov (!%p139_p9), 0   ;;  %vm313_vm0 = vcmask (!%p139_p9), 523264  }
   0xe   : > { %142 = sbr.rel (%p139_p9) target bundleno = 454 (0x1c6), region = 32  ;;  %705 = vset.pattern.permute.xlu0 (!%p139_p9), %v785_v2  ;;  %703 = vset.pattern.permute.xlu1 (!%p139_p9), %v785_v2  ;;  %v166_v5 = vld [vmem:[%s975_s1 + $0x18] sm:$0xff] (!%p139_p9)  ;;  %v168_v6 = vld [vmem:[%s975_s1 + $0x28] sm:$0xff] (!%p139_p9)  ;;  %v167_v7 = vld [vmem:[%s975_s1 + $0x20] sm:$0xff] (!%p139_p9)  ;;  %v787_v12 = vmov (!%p139_p9), 2   ;;  %v788_v13 = vmov (!%p139_p9), 3  }
   0xf   : > { %234 = vperm.xlu0 (!%p139_p9), %705, %v165_v0   ;;  %226 = vperm.xlu1 (!%p139_p9), %703, %v865_v1   ;;  %v169_v8 = vld [vmem:[%s975_s1 + $0x30] sm:$0xff] (!%p139_p9)  ;;  %v170_v9 = vld [vmem:[%s975_s1 + $0x38] sm:$0xff] (!%p139_p9)  ;;  %v273_v10 = vld [vmem:[%s976_s2] sm:$0xff] (!%p139_p9)  ;;  %v789_v14 = vmov (!%p139_p9), 4   ;;  %p159_p10 = scmp.lt.s32.totalorder (!%p139_p9), %s832_s16, 1  ;;  %s157_s24 = sand.u32 (!%p139_p9), 1, %s775_s13  }
  0x10   : > { %v277_v11 = vld [vmem:[%s976_s2 + $0x20] sm:$0xff] (!%p139_p9)  ;;  %623 = vmatprep.mubr.msk.f32.mxu0 (!%p139_p9), %vm313_vm0, %v273_v10  ;;  %v274_v60 = vld [vmem:[%s976_s2 + $0x8] sm:$0xff] (!%p139_p9)  ;;  %v275_v62 = vld [vmem:[%s976_s2 + $0x10] sm:$0xff] (!%p139_p9)  ;;  %s588_s25 = sshll.u32 (!%p139_p9), %s832_s16, 4  ;;  %s511_s4 = scalar_lea.sflag (!%p139_p9), [#allocation3], %s157_s24 }
  0x11   : > { %629 = vmatprep.mubr.msk.f32.mxu1 (!%p139_p9), %vm313_vm0, %v277_v11  ;;  %v278_v61 = vld [vmem:[%s976_s2 + $0x28] sm:$0xff] (!%p139_p9)  ;;  %v279_v63 = vld [vmem:[%s976_s2 + $0x30] sm:$0xff] (!%p139_p9)  ;;  %s932_s30 = scalar_lea.hbm (!%p139_p9), %s977_s3, %s588_s25 }
  0x13   : > { %706 = vset.pattern.permute.xlu0 (!%p139_p9), %v786_v4  ;;  %230 = vperm.xlu1 (!%p139_p9), %703, %v164_v3  }
  0x14   : > { %173 = vperm.xlu0 (!%p139_p9), %706, %v865_v1  }
  0x15   : > { %s160_s26 = scalar_select %p159_p10, %s832_s16, 1 }
  0x16   : > { %s790_s16 = smov [#allocation2]  }
  0x17   : > { %704 = vset.pattern.permute.xlu1 %v786_v4  ;;  %s161_s29 = scalar_lea.vmem %s974_s0, %s160_s26  ;;  %s158_s26 = scalar_lea.vmem [#allocation2], %s157_s24 }
  0x18   : > { %178 = vperm.xlu0 %706, %v164_v3   ;;  %188 = vperm.xlu1 %704, %v166_v5   ;;  %v579_v17 = vld [vmem:[%s161_s29] ss:$0 sm:$0xff]  ;;  %s523_s27 = sshll.u32 %s158_s26, 4  ;;  %s725_s6 = sshll.u32 %s790_s16, 4  ;;  %s934_s27 = int_to_ptr.vmem [resolvable:$true] %s523_s27  ;;  %s726_s6 = int_to_ptr.vmem [resolvable:$false] %s725_s6 }
  0x19   : > { %s721_s5 = scalar_lea.vmem %s934_s27, 16  ;;  %s727_s7 = scalar_lea.vmem %s726_s6, 32 }
  0x1a   : > { %p722_p11 = scmp.ne.s32.totalorder %s934_s27, %s721_s5  ;;  %p728_p0 = scmp.lt.s32.totalorder %s934_s27, %s726_s6 }
  0x1b   : > { %p729_p1 = scmp.lt.s32.totalorder %s727_s7, %s721_s5 }
  0x1c   : > { %183 = vperm.xlu0 %706, %v165_v0   ;;  %707 = vset.pattern.permute.xlu1 %v785_v2  ;;  %p723_p12 = pnand %p722_p11, %p849_p5 }
  0x1d   : > { %238 = vperm.xlu1 %707, %v166_v5   ;;  %p730_p2 = por %p729_p1, %p728_p0 }
  0x1e   : > { %p724_p13 = pneg %p723_p12 }
  0x20   : > { %198 = vperm.xlu0 %706, %v168_v6   ;;  %p731_p3 = pnand %p730_p2, %p724_p13 }
  0x21   : > { %708 = vset.pattern.permute.xlu1 %v786_v4 }
  0x22   : > { %193 = vperm.xlu1 %708, %v167_v7  }
  0x24   : > { %203 = vperm.xlu0 %706, %v169_v8  }
  0x26   : > { %709 = vset.pattern.permute.xlu1 %v785_v2 }
  0x27   : > { %242 = vperm.xlu1 %709, %v167_v7  }
  0x28   : > { %711 = vset.pattern.permute.xlu0 %v785_v2 }
  0x29   : > { %250 = vperm.xlu0 %711, %v169_v8  }
  0x2b   : > { %246 = vperm.xlu1 %709, %v168_v6  }
  0x2d   : > { %714 = vset.pattern.permute.xlu0 %v787_v12 }
  0x2e   : > { %286 = vperm.xlu0 %714, %v164_v3  }
  0x2f   : > { %710 = vset.pattern.permute.xlu1 %v786_v4 }
  0x30   : > { %208 = vperm.xlu1 %710, %v170_v9  }
  0x32   : > { %715 = vset.pattern.permute.xlu0 %v788_v13 }
  0x33   : > { %452 = vperm.xlu0 %715, %v865_v1  }
  0x34   : > { %712 = vset.pattern.permute.xlu1 %v785_v2 }
  0x35   : > { %254 = vperm.xlu1 %712, %v170_v9  }
  0x37   : > { %460 = vperm.xlu0 %715, %v165_v0  }
  0x39   : > { %713 = vset.pattern.permute.xlu1 %v787_v12 }
  0x3a   : > { %282 = vperm.xlu1 %713, %v865_v1  }
  0x3b   : > { %464 = vperm.xlu0 %715, %v166_v5  }
  0x3e   : > { %290 = vperm.xlu1 %713, %v165_v0   ;;  %v276_v0 = vld [vmem:[%s976_s2 + $0x18] sm:$0xff] }
  0x3f   : > { %468 = vperm.xlu0 %715, %v167_v7  }
  0x42   : > { %294 = vperm.xlu1 %713, %v166_v5  }
  0x43   : > { %472 = vperm.xlu0 %715, %v168_v6  }
  0x46   : > { %716 = vset.pattern.permute.xlu1 %v788_v13 }
  0x47   : > { %456 = vperm.xlu1 %716, %v164_v3   ;;  %480 = vperm.xlu0 %715, %v170_v9  }
  0x4b   : > { %717 = vset.pattern.permute.xlu1 %v787_v12  ;;  %720 = vset.pattern.permute.xlu0 %v789_v14 }
  0x4c   : > { %298 = vperm.xlu1 %717, %v167_v7  }
  0x50   : > { %302 = vperm.xlu1 %717, %v168_v6  }
  0x54   : > { %306 = vperm.xlu1 %717, %v169_v8  }
  0x58   : > { %310 = vperm.xlu1 %717, %v170_v9  }
  0x5c   : > { %718 = vset.pattern.permute.xlu1 %v788_v13 }
  0x5d   : > { %476 = vperm.xlu1 %718, %v169_v8  }
  0x61   : > { %719 = vset.pattern.permute.xlu1 %v789_v14 }
  0x62   : > { %505 = vperm.xlu1 %719, %v865_v1   ;;  %v280_v1 = vld [vmem:[%s976_s2 + $0x38] sm:$0xff] }
  0x8e   : > { %v227_v15 = vpop.permute.xlu1 %226  ;;  %v235_v16 = vpop.permute.xlu0 %234 }
  0x92   : > { %v231_v18 = vpop.permute.xlu1 %230 }
  0x93   : > { %v174_v19 = vpop.permute.xlu0 %173 }
  0x94   : > { %v217_v20 = vmul.f32 %v579_v17, %v174_v19 }
  0x96   : > { %v257_v23 = vadd.f32 %v227_v15, %v217_v20 }
  0x97   : > { %v179_v21 = vpop.permute.xlu0 %178  ;;  %v189_v22 = vpop.permute.xlu1 %188 }
  0x98   : > { %v218_v24 = vmul.f32 %v579_v17, %v179_v21  ;;  %v220_v26 = vmul.f32 %v579_v17, %v189_v22  ;;  %v265_v28 = vmax.f32 %v257_v23, 0.0 }
  0x9a   : > { %v258_v25 = vadd.f32 %v231_v18, %v218_v24 }
  0x9b   : > { %v184_v27 = vpop.permute.xlu0 %183 }
  0x9c   : > { %v266_v29 = vmax.f32 %v258_v25, 0.0  ;;  %v219_v30 = vmul.f32 %v579_v17, %v184_v27  ;;  %v239_v31 = vpop.permute.xlu1 %238 }
  0x9d   : > { %v260_v32 = vadd.f32 %v239_v31, %v220_v26 }
  0x9e   : > { %v635_v33 = vpack.c.bf16 %v266_v29, %v265_v28  ;;  %v259_v34 = vadd.f32 %v235_v16, %v219_v30 }
  0x9f   : > { %v268_v35 = vmax.f32 %v260_v32, 0.0  ;;  %v199_v39 = vpop.permute.xlu0 %198 }
  0xa0   : > { %v267_v36 = vmax.f32 %v259_v34, 0.0  ;;  %636 = vmatprep.subr.bf16.mxu0 %v635_v33  ;;  %651 = vmatprep.subr.bf16.mxu1 %v635_v33  ;;  %v222_v42 = vmul.f32 %v579_v17, %v199_v39 }
  0xa1   : > { %v194_v37 = vpop.permute.xlu1 %193  ;;  %638 = vmatpush3.bf16.msra.mxu0 %v635_v33  ;;  %655 = vmatpush3.bf16.msra.mxu1 %v635_v33 }
  0xa2   : > { %v639_v38 = vpack.c.bf16 %v268_v35, %v267_v36  ;;  %v221_v41 = vmul.f32 %v579_v17, %v194_v37 }
  0xa3   : > { %v204_v44 = vpop.permute.xlu0 %203 }
  0xa4   : > { %640 = vmatprep.subr.bf16.mxu0 %v639_v38  ;;  %652 = vmatprep.subr.bf16.mxu1 %v639_v38  ;;  %v223_v52 = vmul.f32 %v579_v17, %v204_v44 }
  0xa5   : > { %642 = vmatpush3.bf16.msra.mxu0 %v639_v38  ;;  %656 = vmatpush3.bf16.msra.mxu1 %v639_v38 }
  0xa6   : > { %v243_v40 = vpop.permute.xlu1 %242 }
  0xa7   : > { %v261_v43 = vadd.f32 %v243_v40, %v221_v41 }
  0xa8   : > { %v251_v51 = vpop.permute.xlu0 %250 }
  0xa9   : > { %v269_v47 = vmax.f32 %v261_v43, 0.0  ;;  %v263_v53 = vadd.f32 %v251_v51, %v223_v52 }
  0xaa   : > { %v247_v45 = vpop.permute.xlu1 %246 }
  0xab   : > { %v262_v46 = vadd.f32 %v247_v45, %v222_v42  ;;  %v271_v57 = vmax.f32 %v263_v53, 0.0 }
  0xad   : > { %v270_v48 = vmax.f32 %v262_v46, 0.0  ;;  %v287_v5 = vpop.permute.xlu0 %286 }
  0xaf   : > { %v643_v49 = vpack.c.bf16 %v270_v48, %v269_v47  ;;  %v209_v50 = vpop.permute.xlu1 %208 }
  0xb0   : > { %v224_v54 = vmul.f32 %v579_v17, %v209_v50 }
  0xb1   : > { %644 = vmatprep.subr.bf16.mxu0 %v643_v49  ;;  %653 = vmatprep.subr.bf16.mxu1 %v643_v49 }
  0xb2   : > { %646 = vmatpush3.bf16.msra.mxu0 %v643_v49  ;;  %657 = vmatpush3.bf16.msra.mxu1 %v643_v49  ;;  %v453_v7 = vpop.permute.xlu0 %452 }
  0xb4   : > { %v255_v55 = vpop.permute.xlu1 %254 }
  0xb5   : > { %v264_v56 = vadd.f32 %v255_v55, %v224_v54 }
  0xb6   : > { %v461_v9 = vpop.permute.xlu0 %460 }
  0xb7   : > { %v272_v58 = vmax.f32 %v264_v56, 0.0 }
  0xb9   : > { %v647_v59 = vpack.c.bf16 %v272_v58, %v271_v57  ;;  %v283_v2 = vpop.permute.xlu1 %282 }
  0xba   : > { %v465_v11 = vpop.permute.xlu0 %464 }
  0xbb   : > { %648 = vmatprep.subr.bf16.mxu0 %v647_v59  ;;  %654 = vmatprep.subr.bf16.mxu1 %v647_v59 }
  0xbc   : > { %650 = vmatpush3.bf16.msra.mxu0 %v647_v59  ;;  %658 = vmatpush3.bf16.msra.mxu1 %v647_v59 }
  0xbd   : > { %v291_v3 = vpop.permute.xlu1 %290 }
  0xbe   : > { %v469_v30 = vpop.permute.xlu0 %468 }
  0xbf   : > { %624 = vmatmul.mubr.msk.f32.vlgmr.msra.gmra.mrb[0].mxu0 %vm313_vm0, %v274_v60  ;;  %630 = vmatmul.mubr.msk.f32.vlgmr.msra.gmra.mrb[0].mxu1 %vm313_vm0, %v278_v61 }
  0xc0   : > { %626 = vmatprep.mubr.msk.f32.mxu0 %vm313_vm0, %v275_v62  ;;  %632 = vmatprep.mubr.msk.f32.mxu1 %vm313_vm0, %v279_v63 }
  0xc1   : > { %v295_v4 = vpop.permute.xlu1 %294 }
  0xc2   : > { %v473_v43 = vpop.permute.xlu0 %472 }
  0xc3   : > { %627 = vmatmul.mubr.msk.f32.gmra.mrb[2].mxu0 %vm313_vm0, %v276_v0  ;;  %633 = vmatmul.mubr.msk.f32.gmra.mrb[2].mxu1 %vm313_vm0, %v280_v1 }
  0xc6   : > { %v457_v6 = vpop.permute.xlu1 %456  ;;  %v481_v53 = vpop.permute.xlu0 %480 }
  0xcb   : > { %v299_v8 = vpop.permute.xlu1 %298 }
  0xcf   : > { %v303_v10 = vpop.permute.xlu1 %302 }
  0xd3   : > { %v307_v18 = vpop.permute.xlu1 %306 }
  0xd7   : > { %v311_v38 = vpop.permute.xlu1 %310 }
  0xdc   : > { %v477_v47 = vpop.permute.xlu1 %476 }
  0xe1   : > { %v506_v62 = vpop.permute.xlu1 %505 }
 0x192   : > { %v625_v12 = vpop.f32.mrb[0].mxu0  ;;  %v631_v13 = vpop.f32.mrb[0].mxu1 }
 0x193   : > { %v410_v14 = vadd.f32 %v625_v12, %v287_v5  ;;  %v404_v15 = vpop.f32.mrb[1].mxu0  ;;  %v424_v16 = vpop.f32.mrb[1].mxu1  ;;  %v430_v31 = vadd.f32 %v631_v13, %v303_v10 }
 0x194   : > { %v405_v17 = vadd.f32 %v404_v15, %v283_v2  ;;  %v425_v28 = vadd.f32 %v424_v16, %v299_v8 }
 0x195   : > { %v444_v19 = vmax.f32 %v410_v14, 0.0  ;;  %v448_v39 = vmax.f32 %v430_v31, 0.0 }
 0x196   : > { %v443_v20 = vmax.f32 %v405_v17, 0.0  ;;  %v628_v21 = vpop.f32.mrb[2].mxu0  ;;  %v634_v22 = vpop.f32.mrb[2].mxu1  ;;  %v447_v35 = vmax.f32 %v425_v28, 0.0 }
 0x197   : > { %v484_v23 = vmul.f32 %v457_v6, %v444_v19  ;;  %v420_v24 = vadd.f32 %v628_v21, %v295_v4  ;;  %v414_v25 = vpop.f32.mrb[3].mxu0  ;;  %v434_v26 = vpop.f32.mrb[3].mxu1  ;;  %v440_v41 = vadd.f32 %v634_v22, %v311_v38  ;;  %v488_v48 = vmul.f32 %v473_v43, %v448_v39 }
 0x198   : > { %v483_v27 = vmul.f32 %v453_v7, %v443_v20  ;;  %v415_v29 = vadd.f32 %v414_v25, %v291_v3  ;;  %v435_v37 = vadd.f32 %v434_v26, %v307_v18  ;;  %v487_v44 = vmul.f32 %v469_v30, %v447_v35 }
 0x199   : > { %v446_v33 = vmax.f32 %v420_v24, 0.0  ;;  %v450_v49 = vmax.f32 %v440_v41, 0.0 }
 0x19a   : > { %v491_v32 = vadd.f32 %v484_v23, %v483_v27  ;;  %v445_v34 = vmax.f32 %v415_v29, 0.0  ;;  %v449_v46 = vmax.f32 %v435_v37, 0.0 }
 0x19b   : > { %v486_v40 = vmul.f32 %v465_v11, %v446_v33  ;;  %v490_v54 = vmul.f32 %v481_v53, %v450_v49 }
 0x19c   : > { %v485_v36 = vmul.f32 %v461_v9, %v445_v34  ;;  %v489_v51 = vmul.f32 %v477_v47, %v449_v46 }
 0x19e   : > { %v492_v42 = vadd.f32 %v491_v32, %v485_v36 }
 0x1a0   : > { %v493_v45 = vadd.f32 %v492_v42, %v486_v40 }
 0x1a2   : > { %v494_v50 = vadd.f32 %v493_v45, %v487_v44 }
 0x1a4   : > { %v495_v52 = vadd.f32 %v494_v50, %v488_v48 }
 0x1a6   : > { %v496_v55 = vadd.f32 %v495_v52, %v489_v51 }
 0x1a8   : > { %v497_v56 = vadd.f32 %v496_v55, %v490_v54 }
 0x1aa   : > { %v498_v57 = vrot.slane %v497_v56, 4 }
 0x1ac   : > { %v499_v58 = vadd.f32 %v498_v57, %v497_v56 }
 0x1ae   : > { %v500_v59 = vrot.slane %v499_v58, 2 }
 0x1b0   : > { %v501_v60 = vadd.f32 %v500_v59, %v499_v58 }
 0x1b2   : > { %v502_v61 = vrot.slane %v501_v60, 1 }
 0x1b4   : > { %v503_v63 = vadd.f32 %v502_v61, %v501_v60 }
 0x1b6   : > { %v508_v0 = vadd.f32 %v506_v62, %v503_v63 }
 0x1b8   : > { %509 = vst [vmem:[%s158_s26] sm:$0x1] %v508_v0 }
 0x1b9   : > { %734 = shalt.err (!%p731_p3)
}
 0x1ba   : > { %s735_s8 = scalar_lea.hbm %s932_s30, 16  ;;  %s739_s11 = scalar_lea.hbm %s977_s3, 32 }
 0x1bb   : > { %p736_p4 = scmp.ne.s32.totalorder %s932_s30, %s735_s8  ;;  %p740_p9 = scmp.lt.u32.totalorder %s932_s30, %s977_s3 }
 0x1bc   : > { %p741_p10 = scmp.lt.u32.totalorder %s739_s11, %s735_s8  ;;  %p743_p12 = scmp.lt.u32.totalorder %s735_s8, %s932_s30 }
 0x1bd   : > { %p737_p7 = pnand %p736_p4, %p849_p5 }
 0x1be   : > { %p742_p11 = por %p741_p10, %p740_p9 }
 0x1bf   : > { %p738_p8 = pneg %p737_p7 }
 0x1c0   : > { %p744_p13 = por %p743_p12, %p742_p11 }
 0x1c2   : > { %p745_p0 = pnand %p744_p13, %p738_p8 }
 0x1c4   : > { %748 = shalt.err (!%p745_p0)
}
 0x1c5   : > { %659 = dma.vmem_to_hbm [thread:$0]  (%p849_p5), %s934_s27, 16, %s932_s30, %s511_s4  }
 0x1c6 PF: > { %p665_p1 = scmp.ge.s32.totalorder %s783_s15, 2  ;;  %s535_s20 = sand.u32 1, %s771_s12  }
 0x1c7   : > { %s536_s24 = scalar_lea.sflag [#allocation3], %s535_s20 }
 0x1c8   : > { %p662_p2 = pnand %p665_p1, %p853_p6 }
 0x1ca   : > { %766 = dma.done.wait (!%p662_p2), %s536_s24, 16  }
 0x1cb   : > { %768 = vsyncadd (!%p662_p2), %s536_s24, 4294967280  ;;  %p13_p3 = scmp.ge.s32.totalorder %s836_s18, 4   ;;  %s980_s12 = smov %s775_s13 }
 0x1cc   : > { %s981_s13 = smov %s779_s14  ;;  %s982_s14 = smov %s847_s21 }
 0x1cd   : > { %s983_s15 = smov %s836_s18  ;;  %15 = sbr.rel (!%p13_p3) target bundleno = 3 (0x3), region = 67 }
 0x1d4   :  { %540 = vsyncpa [#allocation3], 1 }
 0x1d5   :  { %542 = vsyncpa [#allocation3 + $0x1], 1 }

</bundles_post_ra>
